<compile_context>
chip_gen: v7x
topology: tpu7x:2x2x1
jax: 0.10.0
libtpu: 0.0.40
codegen_flags: <defaults>
</compile_context>

<pallas_src>
import functools

import jax
import jax.numpy as jnp
from jax import lax
from jax.experimental import pallas as pl
from jax.experimental.pallas import tpu as pltpu


# ------------------------------- fused kernel ------------------------------ #

def _down_a_kernel(xs_ref, w1_ref, b1_ref, w2a_ref, b2a_ref, w2b_ref, b2b_ref,
                   o_ref, carry_ref, *, c1, c2, Wo, tr):
    """One grid step = one image (axis 0) x one block of `tr` output rows (axis 1).

    xs_ref    : (1, tr*Wo, 4*c1) bf16  space-to-depth input: row = output pixel,
                                       lane layout = [di][dj][c]   (2x2 patch x chans)
    o_ref     : (1, tr*Wo, 2*c2) f32   row = output pixel, lanes = [branch1 | branch2]
    carry_ref : (Wo, 4*c2)       bf16  last h-row of this block, consumed as the top
                                       halo by the next row block of the same image.
    """
    rb = pl.program_id(1)
    rows = tr * Wo

    xs = xs_ref[0]                                            # (rows, 4*c1) bf16

    # previous block's last h row (zero padding when this is the image's top block)
    carry = carry_ref[...]
    h_prev = jnp.where(rb == 0, jnp.zeros_like(carry), carry)  # (Wo, 4*c2)

    # ---- branch 1: fused 2x2 max-pool + 1x1 conv (+BN) + SiLU ----------------
    xm = jnp.maximum(jnp.maximum(xs[:, 0 * c1:1 * c1], xs[:, 1 * c1:2 * c1]),
                     jnp.maximum(xs[:, 2 * c1:3 * c1], xs[:, 3 * c1:4 * c1]))
    a1 = jnp.dot(xm, w1_ref[...], preferred_element_type=jnp.float32) + b1_ref[...]
    y1 = a1 * jax.nn.sigmoid(a1)                              # (rows, c2) f32

    # ---- branch 2, stage 1: 1x1 conv (+BN) + SiLU on each of the 4 sub-pixels --
    hs = []
    for p in range(4):                                        # p = di*2 + dj
        ap = jnp.dot(xs[:, p * c1:(p + 1) * c1], w2a_ref[...],
                     preferred_element_type=jnp.float32) + b2a_ref[...]
        hs.append((ap * jax.nn.sigmoid(ap)).astype(jnp.bfloat16))
    h = jnp.concatenate(hs, axis=1)                           # (rows, 4*c2), [di][dj][c]

    # ---- branch 2, stage 2: 3x3 stride-2 conv (+BN) + SiLU as ONE matmul -------
    # On the space-to-depth layout the 3x3/s2 conv reads only the output-pixel
    # neighbours at offsets {-1,0} x {-1,0}; gather those 4 neighbours and do a
    # single (rows, 16*c2) x (16*c2, c2) matmul.
    if tr > 1:
        h_up = jnp.concatenate([h_prev, h[:(tr - 1) * Wo, :]], axis=0)
    else:
        h_up = h_prev                                         # (rows, 4*c2)

    wo_is_zero = (lax.broadcasted_iota(jnp.int32, (rows, 1), 0) % Wo) == 0

    def left_of(v):   # value of the left neighbour (wo-1); zero padding at wo == 0
        shifted = jnp.concatenate(
            [jnp.zeros((1, 4 * c2), v.dtype), v[:-1, :]], axis=0)
        return jnp.where(wo_is_zero, jnp.zeros_like(shifted), shifted)

    feats = jnp.concatenate(
        [left_of(h_up), h_up, left_of(h), h], axis=1)         # (rows, 16*c2)
    a3 = jnp.dot(feats, w2b_ref[...], preferred_element_type=jnp.float32) + b2b_ref[...]
    y2 = a3 * jax.nn.sigmoid(a3)                              # (rows, c2) f32

    # carry this block's last output-row of h to the next row block (same image)
    carry_ref[...] = h[(tr - 1) * Wo:, :]

    # ---- channel concat + store ------------------------------------------------
    o_ref[0] = jnp.concatenate([y1, y2], axis=1).astype(o_ref.dtype)


# ------------------------------- host wrapper ------------------------------- #

def _auto_row_block(Ho, Wo, c1, c2, budget_bytes=8 << 20):
    """Largest output-row block whose working set fits a conservative VMEM budget
    (kept small enough for v7x's 64 MiB VMEM with double-buffered inputs/outputs)."""
    per_row = Wo * (
        2 * (4 * c1) * 2        # xs block, double buffered, bf16
        + 2 * (2 * c2) * 4      # output block, double buffered, f32
        + 8 * (4 * c2) * 2      # h / h_up / shifted copies / feats (bf16)
        + 3 * c2 * 4            # f32 accumulators
    )
    tr = max(1, min(Ho, budget_bytes // max(per_row, 1)))
    while tr > 1 and (Ho % tr != 0 or (tr * Wo) % 8 != 0):
        tr -= 1
    if Ho % tr != 0 or ((tr * Wo) % 8 != 0 and tr != Ho):
        tr = Ho
    return tr


@functools.partial(jax.jit, static_argnames=("row_block",))
def down_a(x_nchw, params, row_block=None):
    N, c1, H, W = x_nchw.shape
    assert H % 2 == 0 and W % 2 == 0, "DownA requires even spatial dims"
    Ho, Wo = H // 2, W // 2
    c2 = params["b1"].shape[1]

    tr = _auto_row_block(Ho, Wo, c1, c2) if row_block is None else row_block
    assert Ho % tr == 0, (Ho, tr)
    assert (tr * Wo) % 8 == 0 or tr == Ho, (tr, Wo)

    # Space-to-depth: one row per OUTPUT pixel, lanes = [di][dj][c1] of its 2x2 patch.
    # (single XLA transpose; replaces the NCHW->NHWC transpose we needed anyway)
    xs = x_nchw.reshape(N, c1, Ho, 2, Wo, 2)
    xs = jnp.transpose(xs, (0, 2, 4, 3, 5, 1)).reshape(N, Ho * Wo, 4 * c1)
    xs = xs.astype(jnp.bfloat16)

    kernel = functools.partial(_down_a_kernel, c1=c1, c2=c2, Wo=Wo, tr=tr)
    rows = tr * Wo
    out = pl.pallas_call(
        kernel,
        out_shape=jax.ShapeDtypeStruct((N, Ho * Wo, 2 * c2), jnp.float32),
        grid_spec=pltpu.PrefetchScalarGridSpec(
            num_scalar_prefetch=0,
            grid=(N, Ho // tr),
            in_specs=[
                pl.BlockSpec((1, rows, 4 * c1), lambda n, rb: (n, rb, 0)),
                pl.BlockSpec((c1, c2), lambda n, rb: (0, 0)),
                pl.BlockSpec((1, c2), lambda n, rb: (0, 0)),
                pl.BlockSpec((c1, c2), lambda n, rb: (0, 0)),
                pl.BlockSpec((1, c2), lambda n, rb: (0, 0)),
                pl.BlockSpec((16 * c2, c2), lambda n, rb: (0, 0)),
                pl.BlockSpec((1, c2), lambda n, rb: (0, 0)),
            ],
            out_specs=pl.BlockSpec((1, rows, 2 * c2), lambda n, rb: (n, rb, 0)),
            scratch_shapes=[pltpu.VMEM((Wo, 4 * c2), jnp.bfloat16)],
        ),
        compiler_params=pltpu.CompilerParams(
            dimension_semantics=("parallel", "arbitrary")),
    )(xs, params["w1"], params["b1"], params["w2a"], params["b2a"],
      params["w2b_big"], params["b2b"])

    out = out.reshape(N, Ho, Wo, 2 * c2)
    # TODO(synk): if the surrounding model runs NHWC, return `out` directly and skip
    #             this transpose (it is the only remaining layout copy).
    return jnp.transpose(out, (0, 3, 1, 2))


# ----------------------------- parameter setup ----------------------------- #

def _fold_bn(w_oihw, gamma, beta, mean, var, eps=1e-5):
    """Fold inference-mode BN into conv weight (OIHW) & bias."""
    scale = gamma / jnp.sqrt(var + eps)
    w_scaled = w_oihw * scale.reshape((-1,) + (1,) * (w_oihw.ndim - 1))
    b = beta - mean * scale
    return w_scaled, b


def init_params(key, c1, c2):
    ks = jax.random.split(key, 6)

    def bn(k):
        kg, kb, km, kv = jax.random.split(k, 4)
        return (jax.random.uniform(kg, (c2,), jnp.float32, 0.5, 1.5),   # gamma
                jax.random.normal(kb, (c2,), jnp.float32) * 0.1,        # beta
                jax.random.normal(km, (c2,), jnp.float32) * 0.1,        # running mean
                jax.random.uniform(kv, (c2,), jnp.float32, 0.5, 1.5))   # running var

    # branch1: 1x1 conv c1->c2 (+BN)
    w1 = jax.random.normal(ks[0], (c2, c1, 1, 1), jnp.float32) * 0.2
    w1s, b1 = _fold_bn(w1, *bn(ks[1]))
    # branch2 first: 1x1 conv c1->c2 (+BN)
    w2a = jax.random.normal(ks[2], (c2, c1, 1, 1), jnp.float32) * 0.2
    w2as, b2a = _fold_bn(w2a, *bn(ks[3]))
    # branch2 second: 3x3 stride-2 conv c2->c2 (+BN)
    w2b = jax.random.normal(ks[4], (c2, c2, 3, 3), jnp.float32) * 0.2
    w2bs, b2b = _fold_bn(w2b, *bn(ks[5]))

    # 1x1 convs as (cin, cout) matmuls, bf16 for the MXU
    w1_mm = w1s[:, :, 0, 0].T.astype(jnp.bfloat16)
    w2a_mm = w2as[:, :, 0, 0].T.astype(jnp.bfloat16)

    # 3x3/s2 conv as ONE (16*c2, c2) matmul on the space-to-depth layout:
    # neighbour offsets (dr, dc) in {-1,0}^2 and sub-pixel (di, dj) in {0,1}^2 map to
    # kernel tap (ki, kj) = (2*dr + di + 1, 2*dc + dj + 1); invalid taps stay zero
    # (they encode the stride-2 decimation and the zero padding).
    w2b_big = jnp.zeros((16 * c2, c2), jnp.float32)
    for oi, (dr, dc) in enumerate([(-1, -1), (-1, 0), (0, -1), (0, 0)]):
        for di in range(2):
            for dj in range(2):
                ki, kj = 2 * dr + di + 1, 2 * dc + dj + 1
                if 0 <= ki < 3 and 0 <= kj < 3:
                    r0 = (oi * 4 + di * 2 + dj) * c2
                    w2b_big = w2b_big.at[r0:r0 + c2, :].set(w2bs[:, :, ki, kj].T)

    return dict(
        w1=w1_mm, b1=b1.reshape(1, c2),
        w2a=w2a_mm, b2a=b2a.reshape(1, c2),
        w2b_big=w2b_big.astype(jnp.bfloat16), b2b=b2b.reshape(1, c2),
        # reference-only copy of the 3x3 weights in HWIO layout (same bf16 values)
        w2b_hwio=jnp.transpose(w2bs, (2, 3, 1, 0)).astype(jnp.bfloat16),
    )


# ------------------------------- pure-JAX reference ------------------------- #

def down_a_reference(x_nchw, params):
    """Pure-JAX reference with identical math (bf16 inputs/weights, f32 accumulation)."""
    silu = lambda v: v * jax.nn.sigmoid(v)
    N, c1, H, W = x_nchw.shape
    Ho, Wo = H // 2, W // 2
    x = jnp.transpose(x_nchw, (0, 2, 3, 1)).astype(jnp.bfloat16)          # NHWC
    xm = x.reshape(N, Ho, 2, Wo, 2, c1).max(axis=(2, 4))                  # 2x2 max-pool
    y1 = silu(jnp.einsum("nhwc,cd->nhwd", xm, params["w1"],
                         preferred_element_type=jnp.float32) + params["b1"][0])
    h = silu(jnp.einsum("nhwc,cd->nhwd", x, params["w2a"],
                        preferred_element_type=jnp.float32) + params["b2a"][0])
    h = h.astype(jnp.bfloat16)
    y2 = lax.conv_general_dilated(h, params["w2b_hwio"], (2, 2), [(1, 1), (1, 1)],
                                  dimension_numbers=("NHWC", "HWIO", "NHWC"),
                                  preferred_element_type=jnp.float32)
    y2 = silu(y2 + params["b2b"][0])
    out = jnp.concatenate([y1, y2], axis=-1)
    return jnp.transpose(out, (0, 3, 1, 2))


# ---------------------------------- main ----------------------------------- #

if __name__ == "__main__":
    key = jax.random.PRNGKey(0)
    kx, kp = jax.random.split(key)

    N, c1, c2, H, W = 2, 4, 8, 16, 16
    x = jax.random.normal(kx, (N, c1, H, W), jnp.float32)        # NCHW like PyTorch
    params = init_params(kp, c1, c2)

    # row_block=4 -> grid (N, Ho/4) = (2, 2): exercises both the top-of-image
    # (zero halo) path and the carried-halo path of the fused kernel.
    out = down_a(x, params, row_block=4)
    out = jax.block_until_ready(out)

    ref = down_a_reference(x, params)
    assert out.shape == (N, 2 * c2, H // 2, W // 2), out.shape
    err = float(jnp.max(jnp.abs(out - ref)))
    assert jnp.allclose(out, ref, rtol=2e-2, atol=2e-2), err

    print("KERNEL_OK")
</pallas_src>

<mosaic_0001>
module attributes {stable_mosaic.version = 11 : i64} {
  func.func @_down_a_kernel(%arg0: i32, %arg1: i32, %arg2: memref<1x32x16xbf16, #tpu.memory_space<vmem>>, %arg3: memref<4x8xbf16, #tpu.memory_space<vmem>>, %arg4: memref<1x8xf32, #tpu.memory_space<vmem>>, %arg5: memref<4x8xbf16, #tpu.memory_space<vmem>>, %arg6: memref<1x8xf32, #tpu.memory_space<vmem>>, %arg7: memref<128x8xbf16, #tpu.memory_space<vmem>>, %arg8: memref<1x8xf32, #tpu.memory_space<vmem>>, %arg9: memref<1x32x16xf32, #tpu.memory_space<vmem>>, %arg10: memref<8x32xbf16, #tpu.memory_space<vmem>>) attributes {dimension_semantics = [#tpu.dimension_semantics<parallel>, #tpu.dimension_semantics<arbitrary>], iteration_bounds = array<i64: 2, 2>, scalar_prefetch = 0 : i64, scratch_operands = 1 : i64, tpu.core_type = #tpu.core_type<tc>, window_params = [{transform_indices = @transform_0, window_bounds = array<i64: 1, 32, 16>}, {pipeline_mode = #tpu.pipeline_mode<synchronous>, transform_indices = @transform_1, window_bounds = array<i64: 4, 8>}, {pipeline_mode = #tpu.pipeline_mode<synchronous>, transform_indices = @transform_2, window_bounds = array<i64: 1, 8>}, {pipeline_mode = #tpu.pipeline_mode<synchronous>, transform_indices = @transform_3, window_bounds = array<i64: 4, 8>}, {pipeline_mode = #tpu.pipeline_mode<synchronous>, transform_indices = @transform_4, window_bounds = array<i64: 1, 8>}, {pipeline_mode = #tpu.pipeline_mode<synchronous>, transform_indices = @transform_5, window_bounds = array<i64: 128, 8>}, {pipeline_mode = #tpu.pipeline_mode<synchronous>, transform_indices = @transform_6, window_bounds = array<i64: 1, 8>}, {transform_indices = @transform_7, window_bounds = array<i64: 1, 32, 16>}]} {
    %c0 = arith.constant 0 : index
    %c0_0 = arith.constant 0 : index
    %c0_1 = arith.constant 0 : index
    %0 = vector.load %arg2[%c0, %c0_0, %c0_1] : memref<1x32x16xbf16, #tpu.memory_space<vmem>>, vector<1x32x16xbf16>
    %1 = vector.shape_cast %0 : vector<1x32x16xbf16> to vector<32x16xbf16>
    %c0_2 = arith.constant 0 : index
    %c0_3 = arith.constant 0 : index
    %2 = vector.load %arg10[%c0_2, %c0_3] : memref<8x32xbf16, #tpu.memory_space<vmem>>, vector<8x32xbf16>
    %c0_i32 = arith.constant 0 : i32
    %3 = arith.cmpi eq, %arg1, %c0_i32 : i32
    %cst = arith.constant 0.000000e+00 : bf16
    %4 = vector.broadcast %cst : bf16 to vector<8x32xbf16>
    %5 = arith.select %3, %4, %2 : vector<8x32xbf16>
    %6 = vector.extract_strided_slice %1 {offsets = [0, 0], sizes = [32, 4], strides = [1, 1]} : vector<32x16xbf16> to vector<32x4xbf16>
    %7 = vector.extract_strided_slice %1 {offsets = [0, 4], sizes = [32, 4], strides = [1, 1]} : vector<32x16xbf16> to vector<32x4xbf16>
    %8 = arith.maximumf %6, %7 : vector<32x4xbf16>
    %9 = vector.extract_strided_slice %1 {offsets = [0, 8], sizes = [32, 4], strides = [1, 1]} : vector<32x16xbf16> to vector<32x4xbf16>
    %10 = vector.extract_strided_slice %1 {offsets = [0, 12], sizes = [32, 4], strides = [1, 1]} : vector<32x16xbf16> to vector<32x4xbf16>
    %11 = arith.maximumf %9, %10 : vector<32x4xbf16>
    %12 = arith.maximumf %8, %11 : vector<32x4xbf16>
    %c0_4 = arith.constant 0 : index
    %c0_5 = arith.constant 0 : index
    %13 = vector.load %arg3[%c0_4, %c0_5] : memref<4x8xbf16, #tpu.memory_space<vmem>>, vector<4x8xbf16>
    %cst_6 = arith.constant dense<0.000000e+00> : vector<32x8xf32>
    %14 = tpu.matmul %12, %13, %cst_6 {dimension_numbers = #tpu.dot_dimension_numbers<[1], [0], [0], [1], [0, 0, 1, 1], [], []>} : vector<32x4xbf16>, vector<4x8xbf16>, vector<32x8xf32> -> vector<32x8xf32>
    %c0_7 = arith.constant 0 : index
    %c0_8 = arith.constant 0 : index
    %15 = vector.load %arg4[%c0_7, %c0_8] : memref<1x8xf32, #tpu.memory_space<vmem>>, vector<1x8xf32>
    %16 = vector.broadcast %15 : vector<1x8xf32> to vector<32x8xf32>
    %17 = arith.addf %14, %16 : vector<32x8xf32>
    %18 = arith.negf %17 : vector<32x8xf32>
    %19 = math.exp %18 : vector<32x8xf32>
    %cst_9 = arith.constant 1.000000e+00 : f32
    %20 = vector.broadcast %cst_9 : f32 to vector<32x8xf32>
    %21 = arith.addf %20, %19 : vector<32x8xf32>
    %22 = arith.divf %20, %21 : vector<32x8xf32>
    %23 = arith.mulf %17, %22 : vector<32x8xf32>
    %24 = vector.extract_strided_slice %1 {offsets = [0, 0], sizes = [32, 4], strides = [1, 1]} : vector<32x16xbf16> to vector<32x4xbf16>
    %c0_10 = arith.constant 0 : index
    %c0_11 = arith.constant 0 : index
    %25 = vector.load %arg5[%c0_10, %c0_11] : memref<4x8xbf16, #tpu.memory_space<vmem>>, vector<4x8xbf16>
    %cst_12 = arith.constant dense<0.000000e+00> : vector<32x8xf32>
    %26 = tpu.matmul %24, %25, %cst_12 {dimension_numbers = #tpu.dot_dimension_numbers<[1], [0], [0], [1], [0, 0, 1, 1], [], []>} : vector<32x4xbf16>, vector<4x8xbf16>, vector<32x8xf32> -> vector<32x8xf32>
    %c0_13 = arith.constant 0 : index
    %c0_14 = arith.constant 0 : index
    %27 = vector.load %arg6[%c0_13, %c0_14] : memref<1x8xf32, #tpu.memory_space<vmem>>, vector<1x8xf32>
    %28 = vector.broadcast %27 : vector<1x8xf32> to vector<32x8xf32>
    %29 = arith.addf %26, %28 : vector<32x8xf32>
    %30 = arith.negf %29 : vector<32x8xf32>
    %31 = math.exp %30 : vector<32x8xf32>
    %cst_15 = arith.constant 1.000000e+00 : f32
    %32 = vector.broadcast %cst_15 : f32 to vector<32x8xf32>
    %33 = arith.addf %32, %31 : vector<32x8xf32>
    %34 = arith.divf %32, %33 : vector<32x8xf32>
    %35 = arith.mulf %29, %34 : vector<32x8xf32>
    %36 = arith.truncf %35 : vector<32x8xf32> to vector<32x8xbf16>
    %37 = vector.extract_strided_slice %1 {offsets = [0, 4], sizes = [32, 4], strides = [1, 1]} : vector<32x16xbf16> to vector<32x4xbf16>
    %c0_16 = arith.constant 0 : index
    %c0_17 = arith.constant 0 : index
    %38 = vector.load %arg5[%c0_16, %c0_17] : memref<4x8xbf16, #tpu.memory_space<vmem>>, vector<4x8xbf16>
    %cst_18 = arith.constant dense<0.000000e+00> : vector<32x8xf32>
    %39 = tpu.matmul %37, %38, %cst_18 {dimension_numbers = #tpu.dot_dimension_numbers<[1], [0], [0], [1], [0, 0, 1, 1], [], []>} : vector<32x4xbf16>, vector<4x8xbf16>, vector<32x8xf32> -> vector<32x8xf32>
    %c0_19 = arith.constant 0 : index
    %c0_20 = arith.constant 0 : index
    %40 = vector.load %arg6[%c0_19, %c0_20] : memref<1x8xf32, #tpu.memory_space<vmem>>, vector<1x8xf32>
    %41 = vector.broadcast %40 : vector<1x8xf32> to vector<32x8xf32>
    %42 = arith.addf %39, %41 : vector<32x8xf32>
    %43 = arith.negf %42 : vector<32x8xf32>
    %44 = math.exp %43 : vector<32x8xf32>
    %cst_21 = arith.constant 1.000000e+00 : f32
    %45 = vector.broadcast %cst_21 : f32 to vector<32x8xf32>
    %46 = arith.addf %45, %44 : vector<32x8xf32>
    %47 = arith.divf %45, %46 : vector<32x8xf32>
    %48 = arith.mulf %42, %47 : vector<32x8xf32>
    %49 = arith.truncf %48 : vector<32x8xf32> to vector<32x8xbf16>
    %50 = vector.extract_strided_slice %1 {offsets = [0, 8], sizes = [32, 4], strides = [1, 1]} : vector<32x16xbf16> to vector<32x4xbf16>
    %c0_22 = arith.constant 0 : index
    %c0_23 = arith.constant 0 : index
    %51 = vector.load %arg5[%c0_22, %c0_23] : memref<4x8xbf16, #tpu.memory_space<vmem>>, vector<4x8xbf16>
    %cst_24 = arith.constant dense<0.000000e+00> : vector<32x8xf32>
    %52 = tpu.matmul %50, %51, %cst_24 {dimension_numbers = #tpu.dot_dimension_numbers<[1], [0], [0], [1], [0, 0, 1, 1], [], []>} : vector<32x4xbf16>, vector<4x8xbf16>, vector<32x8xf32> -> vector<32x8xf32>
    %c0_25 = arith.constant 0 : index
    %c0_26 = arith.constant 0 : index
    %53 = vector.load %arg6[%c0_25, %c0_26] : memref<1x8xf32, #tpu.memory_space<vmem>>, vector<1x8xf32>
    %54 = vector.broadcast %53 : vector<1x8xf32> to vector<32x8xf32>
    %55 = arith.addf %52, %54 : vector<32x8xf32>
    %56 = arith.negf %55 : vector<32x8xf32>
    %57 = math.exp %56 : vector<32x8xf32>
    %cst_27 = arith.constant 1.000000e+00 : f32
    %58 = vector.broadcast %cst_27 : f32 to vector<32x8xf32>
    %59 = arith.addf %58, %57 : vector<32x8xf32>
    %60 = arith.divf %58, %59 : vector<32x8xf32>
    %61 = arith.mulf %55, %60 : vector<32x8xf32>
    %62 = arith.truncf %61 : vector<32x8xf32> to vector<32x8xbf16>
    %63 = vector.extract_strided_slice %1 {offsets = [0, 12], sizes = [32, 4], strides = [1, 1]} : vector<32x16xbf16> to vector<32x4xbf16>
    %c0_28 = arith.constant 0 : index
    %c0_29 = arith.constant 0 : index
    %64 = vector.load %arg5[%c0_28, %c0_29] : memref<4x8xbf16, #tpu.memory_space<vmem>>, vector<4x8xbf16>
    %cst_30 = arith.constant dense<0.000000e+00> : vector<32x8xf32>
    %65 = tpu.matmul %63, %64, %cst_30 {dimension_numbers = #tpu.dot_dimension_numbers<[1], [0], [0], [1], [0, 0, 1, 1], [], []>} : vector<32x4xbf16>, vector<4x8xbf16>, vector<32x8xf32> -> vector<32x8xf32>
    %c0_31 = arith.constant 0 : index
    %c0_32 = arith.constant 0 : index
    %66 = vector.load %arg6[%c0_31, %c0_32] : memref<1x8xf32, #tpu.memory_space<vmem>>, vector<1x8xf32>
    %67 = vector.broadcast %66 : vector<1x8xf32> to vector<32x8xf32>
    %68 = arith.addf %65, %67 : vector<32x8xf32>
    %69 = arith.negf %68 : vector<32x8xf32>
    %70 = math.exp %69 : vector<32x8xf32>
    %cst_33 = arith.constant 1.000000e+00 : f32
    %71 = vector.broadcast %cst_33 : f32 to vector<32x8xf32>
    %72 = arith.addf %71, %70 : vector<32x8xf32>
    %73 = arith.divf %71, %72 : vector<32x8xf32>
    %74 = arith.mulf %68, %73 : vector<32x8xf32>
    %75 = arith.truncf %74 : vector<32x8xf32> to vector<32x8xbf16>
    %76 = tpu.concatenate %36, %49, %62, %75 in 1 : vector<32x8xbf16>, vector<32x8xbf16>, vector<32x8xbf16>, vector<32x8xbf16> -> vector<32x32xbf16>
    %77 = vector.extract_strided_slice %76 {offsets = [0, 0], sizes = [24, 32], strides = [1, 1]} : vector<32x32xbf16> to vector<24x32xbf16>
    %78 = tpu.concatenate %5, %77 in 0 : vector<8x32xbf16>, vector<24x32xbf16> -> vector<32x32xbf16>
    %79 = tpu.iota {dimensions = array<i32: 0>} : vector<32x1xi32>
    %c8_i32 = arith.constant 8 : i32
    %c0_i32_34 = arith.constant 0 : i32
    %80 = arith.cmpi eq, %c8_i32, %c0_i32_34 : i32
    %c1_i32 = arith.constant 1 : i32
    %81 = arith.select %80, %c1_i32, %c8_i32 : i32
    %82 = vector.broadcast %81 : i32 to vector<32x1xi32>
    %83 = arith.remsi %79, %82 : vector<32x1xi32>
    %c0_i32_35 = arith.constant 0 : i32
    %84 = vector.broadcast %c0_i32_35 : i32 to vector<32x1xi32>
    %85 = arith.cmpi ne, %83, %84 : vector<32x1xi32>
    %c0_i32_36 = arith.constant 0 : i32
    %86 = vector.broadcast %c0_i32_36 : i32 to vector<32x1xi32>
    %87 = arith.cmpi slt, %83, %86 : vector<32x1xi32>
    %c0_i32_37 = arith.constant 0 : i32
    %88 = arith.cmpi slt, %81, %c0_i32_37 : i32
    %89 = vector.broadcast %88 : i1 to vector<32x1xi1>
    %90 = vector.broadcast %89 : vector<32x1xi1> to vector<32x1xi1>
    %91 = arith.xori %87, %90 : vector<32x1xi1>
    %92 = arith.andi %91, %85 : vector<32x1xi1>
    %93 = vector.broadcast %81 : i32 to vector<32x1xi32>
    %94 = arith.addi %83, %93 : vector<32x1xi32>
    %95 = arith.select %92, %94, %83 : vector<32x1xi1>, vector<32x1xi32>
    %c0_i32_38 = arith.constant 0 : i32
    %96 = vector.broadcast %c0_i32_38 : i32 to vector<32x1xi32>
    %97 = arith.cmpi eq, %95, %96 : vector<32x1xi32>
    %cst_39 = arith.constant 0.000000e+00 : bf16
    %98 = vector.broadcast %cst_39 : bf16 to vector<1x32xbf16>
    %99 = vector.extract_strided_slice %78 {offsets = [0, 0], sizes = [31, 32], strides = [1, 1]} : vector<32x32xbf16> to vector<31x32xbf16>
    %100 = tpu.concatenate %98, %99 in 0 : vector<1x32xbf16>, vector<31x32xbf16> -> vector<32x32xbf16>
    %cst_40 = arith.constant 0.000000e+00 : bf16
    %101 = vector.broadcast %cst_40 : bf16 to vector<32x32xbf16>
    %102 = vector.shape_cast %97 : vector<32x1xi1> to vector<32x1xi1>
    %103 = vector.broadcast %102 : vector<32x1xi1> to vector<32x32xi1>
    %104 = arith.select %103, %101, %100 : vector<32x32xi1>, vector<32x32xbf16>
    %cst_41 = arith.constant 0.000000e+00 : bf16
    %105 = vector.broadcast %cst_41 : bf16 to vector<1x32xbf16>
    %106 = vector.extract_strided_slice %76 {offsets = [0, 0], sizes = [31, 32], strides = [1, 1]} : vector<32x32xbf16> to vector<31x32xbf16>
    %107 = tpu.concatenate %105, %106 in 0 : vector<1x32xbf16>, vector<31x32xbf16> -> vector<32x32xbf16>
    %cst_42 = arith.constant 0.000000e+00 : bf16
    %108 = vector.broadcast %cst_42 : bf16 to vector<32x32xbf16>
    %109 = vector.shape_cast %97 : vector<32x1xi1> to vector<32x1xi1>
    %110 = vector.broadcast %109 : vector<32x1xi1> to vector<32x32xi1>
    %111 = arith.select %110, %108, %107 : vector<32x32xi1>, vector<32x32xbf16>
    %112 = tpu.concatenate %104, %78, %111, %76 in 1 : vector<32x32xbf16>, vector<32x32xbf16>, vector<32x32xbf16>, vector<32x32xbf16> -> vector<32x128xbf16>
    %c0_43 = arith.constant 0 : index
    %c0_44 = arith.constant 0 : index
    %113 = vector.load %arg7[%c0_43, %c0_44] : memref<128x8xbf16, #tpu.memory_space<vmem>>, vector<128x8xbf16>
    %cst_45 = arith.constant dense<0.000000e+00> : vector<32x8xf32>
    %114 = tpu.matmul %112, %113, %cst_45 {dimension_numbers = #tpu.dot_dimension_numbers<[1], [0], [0], [1], [0, 0, 1, 1], [], []>} : vector<32x128xbf16>, vector<128x8xbf16>, vector<32x8xf32> -> vector<32x8xf32>
    %c0_46 = arith.constant 0 : index
    %c0_47 = arith.constant 0 : index
    %115 = vector.load %arg8[%c0_46, %c0_47] : memref<1x8xf32, #tpu.memory_space<vmem>>, vector<1x8xf32>
    %116 = vector.broadcast %115 : vector<1x8xf32> to vector<32x8xf32>
    %117 = arith.addf %114, %116 : vector<32x8xf32>
    %118 = arith.negf %117 : vector<32x8xf32>
    %119 = math.exp %118 : vector<32x8xf32>
    %cst_48 = arith.constant 1.000000e+00 : f32
    %120 = vector.broadcast %cst_48 : f32 to vector<32x8xf32>
    %121 = arith.addf %120, %119 : vector<32x8xf32>
    %122 = arith.divf %120, %121 : vector<32x8xf32>
    %123 = arith.mulf %117, %122 : vector<32x8xf32>
    %124 = vector.extract_strided_slice %76 {offsets = [24, 0], sizes = [8, 32], strides = [1, 1]} : vector<32x32xbf16> to vector<8x32xbf16>
    %c0_49 = arith.constant 0 : index
    %c0_50 = arith.constant 0 : index
    %125 = vector.load %arg10[%c0_49, %c0_50] : memref<8x32xbf16, #tpu.memory_space<vmem>>, vector<8x32xbf16>
    tpu.vector_store %arg10[%c0_49, %c0_50], %124 {strides = array<i32>} : memref<8x32xbf16, #tpu.memory_space<vmem>>, vector<8x32xbf16>,
    %126 = tpu.concatenate %23, %123 in 1 : vector<32x8xf32>, vector<32x8xf32> -> vector<32x16xf32>
    %c0_51 = arith.constant 0 : index
    %c0_52 = arith.constant 0 : index
    %c0_53 = arith.constant 0 : index
    %127 = vector.load %arg9[%c0_51, %c0_52, %c0_53] : memref<1x32x16xf32, #tpu.memory_space<vmem>>, vector<1x32x16xf32>
    %128 = vector.shape_cast %127 : vector<1x32x16xf32> to vector<32x16xf32>
    %129 = vector.shape_cast %126 : vector<32x16xf32> to vector<1x32x16xf32>
    tpu.vector_store %arg9[%c0_51, %c0_52, %c0_53], %129 {strides = array<i32>} : memref<1x32x16xf32, #tpu.memory_space<vmem>>, vector<1x32x16xf32>,
    return
  }
  func.func @transform_0(%arg0: i32, %arg1: i32) -> (i32, i32, i32) {
    %c0_i32 = arith.constant 0 : i32
    %c0_i32_0 = arith.constant 0 : i32
    return %arg0, %arg1, %c0_i32 : i32, i32, i32
  }
  func.func @transform_1(%arg0: i32, %arg1: i32) -> (i32, i32) {
    %c0_i32 = arith.constant 0 : i32
    %c0_i32_0 = arith.constant 0 : i32
    %c0_i32_1 = arith.constant 0 : i32
    return %c0_i32, %c0_i32_0 : i32, i32
  }
  func.func @transform_2(%arg0: i32, %arg1: i32) -> (i32, i32) {
    %c0_i32 = arith.constant 0 : i32
    %c0_i32_0 = arith.constant 0 : i32
    %c0_i32_1 = arith.constant 0 : i32
    return %c0_i32, %c0_i32_0 : i32, i32
  }
  func.func @transform_3(%arg0: i32, %arg1: i32) -> (i32, i32) {
    %c0_i32 = arith.constant 0 : i32
    %c0_i32_0 = arith.constant 0 : i32
    %c0_i32_1 = arith.constant 0 : i32
    return %c0_i32, %c0_i32_0 : i32, i32
  }
  func.func @transform_4(%arg0: i32, %arg1: i32) -> (i32, i32) {
    %c0_i32 = arith.constant 0 : i32
    %c0_i32_0 = arith.constant 0 : i32
    %c0_i32_1 = arith.constant 0 : i32
    return %c0_i32, %c0_i32_0 : i32, i32
  }
  func.func @transform_5(%arg0: i32, %arg1: i32) -> (i32, i32) {
    %c0_i32 = arith.constant 0 : i32
    %c0_i32_0 = arith.constant 0 : i32
    %c0_i32_1 = arith.constant 0 : i32
    return %c0_i32, %c0_i32_0 : i32, i32
  }
  func.func @transform_6(%arg0: i32, %arg1: i32) -> (i32, i32) {
    %c0_i32 = arith.constant 0 : i32
    %c0_i32_0 = arith.constant 0 : i32
    %c0_i32_1 = arith.constant 0 : i32
    return %c0_i32, %c0_i32_0 : i32, i32
  }
  func.func @transform_7(%arg0: i32, %arg1: i32) -> (i32, i32, i32) {
    %c0_i32 = arith.constant 0 : i32
    %c0_i32_0 = arith.constant 0 : i32
    return %arg0, %arg1, %c0_i32 : i32, i32, i32
  }
}

</mosaic_0001>

<bundles_post_ra>
// kernel: down_a.1
= control target key start
LH: loop header
LB: loop body
LE: loop exit
PB: predicated region body
PF: predicated region fallthrough
CT: control target
= control target key end

     0   :  { %12 = vsyncpa [#allocation4], 0  ;;  %s2208_s0 = inlined_call_operand.vmem [shape: bf16[2,64,16], index: 0, kind: input, shape index: {}]   ;;  %s2209_s1 = inlined_call_operand.vmem [shape: bf16[4,8], index: 1, kind: input, shape index: {}]   ;;  %s2210_s2 = inlined_call_operand.vmem [shape: f32[1,8], index: 2, kind: input, shape index: {}]   ;;  %s2211_s3 = inlined_call_operand.vmem [shape: bf16[4,8], index: 3, kind: input, shape index: {}]   ;;  %s2212_s4 = inlined_call_operand.vmem [shape: f32[1,8], index: 4, kind: input, shape index: {}]   ;;  %s2213_s5 = inlined_call_operand.vmem [shape: bf16[128,8], index: 5, kind: input, shape index: {}]   ;;  %s2214_s6 = inlined_call_operand.vmem [shape: f32[1,8], index: 6, kind: input, shape index: {}]   ;;  %s2215_s7 = inlined_call_operand.hbm [shape: f32[2,64,16], index: 7, kind: output, shape index: {}]  }
   0x1   :  { %14 = vsyncpa [#allocation4 + $0x1], 0  ;;  %s1794_s24 = smov 0   ;;  %s1796_s25 = smov 0  }
   0x2   :  { %s1798_s26 = smov 0   ;;  %s1800_s27 = smov 0  }
   0x3   :  { %s1802_s28 = smov 0   ;;  %s1804_s29 = smov 0  }
   0x4   :  { %s1806_s30 = smov 0   ;;  %s1808_s8 = smov 0  }
   0x5 LB: > { %s1311_s9 = sadd.s32 4294967295, %s1740_s8   ;;  %s1312_s10 = sadd.s32 4294967294, %s1740_s8   ;;  %s1740_s8 = sphi %s1808_s8, %s20_s8   ;;  %s1736_s30 = sphi %s1806_s30, %s2240_s30   ;;  %s1732_s29 = sphi %s1804_s29, %s2239_s29   ;;  %s1728_s28 = sphi %s1802_s28, %s2238_s28   ;;  %s1724_s27 = sphi %s1800_s27, %s2237_s27   ;;  %s1720_s26 = sphi %s1798_s26, %s2236_s26   ;;  %s1716_s25 = sphi %s1796_s25, %s2235_s25   ;;  %s1712_s24 = sphi %s1794_s24, %s2234_s24  }
   0x6   : > { %s29_s11 = sadd.s32 1, %s1732_s29  ;;  %s32_s12 = sadd.s32 1, %s1736_s30 }
   0x7   : > { %p30_p0 = scmp.ge.s32.totalorder %s29_s11, 2  ;;  %p205_p1 = scmp.ne.s32.totalorder %s1720_s26, %s1716_s25 }
   0x8   : > { %p206_p2 = scmp.eq.s32.totalorder %s1311_s9, 3  ;;  %p211_p5 = scmp.ne.s32.totalorder %s1716_s25, %s1712_s24 }
   0x9   : > { %s2242_s11 = smov (%p30_p0, %s29_s11), 0  ;;  %s2244_s12 = smov (!%p30_p0, %s32_s12), %s1736_s30 }
   0xa   : > { %s191_s13 = ssub.s32 %s1732_s29, %s2242_s11  ;;  %p1845_p3 = por %p206_p2, %p205_p1 }
   0xb   : > { %p34_p4 = scmp.ge.s32.totalorder %s2244_s12, 2  ;;  %p212_p6 = scmp.eq.s32.totalorder %s1312_s10, 3 }
   0xc   : > { %p1315_p7 = scmp.ge.s32.totalorder %s1740_s8, 1  ;;  %p261_p9 = scmp.lt.s32.totalorder %s1740_s8, 5 }
   0xd   : > { %s2246_s12 = smov (%p34_p4, %s2244_s12), 0  ;;  %p1854_p8 = por %p212_p6, %p211_p5 }
   0xe   : > { %s190_s16 = ssub.s32 %s1736_s30, %s2246_s12  ;;  %s195_s17 = sadd.s32 1, %s1720_s26 }
   0xf   : > { %s192_s18 = sor.u32 %s191_s13, %s190_s16  ;;  %p262_p10 = pnand %p1315_p7, %p261_p9 }
  0x10   : > { %p193_p11 = scmp.eq.s32.totalorder %s192_s18, 0  ;;  %s1866_s20 = sshll.u32 (!%p262_p10), %s1724_s27, 2  ;;  %v361_v4 = vld [vmem:[%s2209_s1] sm:$0x3] (!%p262_p10)  ;;  %vm386_vm0 = vcmask (!%p262_p10), 1041408   ;;  %vm379_vm1 = vcmask (!%p262_p10), 31744  }
  0x11   : > { %265 = sbr.rel (%p262_p10) target bundleno = 1176 (0x498), region = 48  ;;  %p298_p12 = scmp.lt.s32.totalorder (!%p262_p10), %s1728_s28, 1  ;;  %1453 = vmatprep.subr.msk.bf16.mxu0 (!%p262_p10), %vm386_vm0, %v361_v4  ;;  %v388_v5 = vsel (!%p262_p10), %vm386_vm0, %v361_v4, 0  ;;  %v467_v8 = vld [vmem:[%s2211_s3] sm:$0x3] (!%p262_p10)  ;;  %vm854_vm5 = vcmask (!%p262_p10), 64512  }
  0x12   : > { %s1863_s19 = scalar_select %p193_p11, %s1720_s26, %s195_s17  }
  0x13   : > { %p300_p13 = scmp.lt.s32.totalorder (!%p262_p10), %s1866_s20, 7  ;;  %s1742_s18 = smov (!%p262_p10), 124   ;;  %1404 = vmatpush3.bf16.msra.mxu0 (!%p262_p10), %v388_v5  ;;  %1456 = vmatprep.subr.msk.bf16.mxu1 (!%p262_p10), %vm386_vm0, %v467_v8  ;;  %v488_v10 = vsel (!%p262_p10), %vm386_vm0, %v467_v8, 0  ;;  %v1913_v37 = vld [vmem:[%s2212_s4] ss:$0 sm:$0xff] (!%p262_p10)  ;;  %vm861_vm10 = vcmask (!%p262_p10), 130048  }
  0x14   : > { %1454 = vmatprep.subr.msk.bf16.mxu0 (!%p262_p10), %vm386_vm0, %v467_v8  ;;  %1422 = vmatpush3.bf16.msra.mxu1 (!%p262_p10), %v488_v10  ;;  %s1744_s13 = smov (!%p262_p10), 116   ;;  %p316_p0 = scmp.eq.s32.totalorder (!%p262_p10), %s1724_s27, 0  ;;  %vm866_vm13 = vcmask (!%p262_p10), 195584   ;;  %vm873_vm14 = vcmask (!%p262_p10), 1043456   ;;  %vm1187_vm15 = vcmask (!%p262_p10), 257024  }
  0x18   : > { %s299_s21 = scalar_select %p298_p12, %s1728_s28, 1 }
  0x19   : > { %s301_s22 = scalar_select %p300_p13, %s1866_s20, 7 }
  0x1a   : > { %s1318_s23 = sshll.u32 %s299_s21, 3  ;;  %s1746_s21 = smov 8  }
  0x1b   : > { %s303_s9 = sadd.s32 %s1318_s23, %s301_s22  ;;  %s1747_s22 = smov 24  }
  0x1c   : > { %s1319_s10 = sshll.u32 %s303_s9, 2  ;;  %s1749_s23 = smov 32  }
  0x1d   : > { %s305_s17 = scalar_lea.vmem %s2208_s0, %s1319_s10  ;;  %s1743_s10 = smov 120  }
  0x1e   : > { %v311_v0 = vld [vmem:[%s305_s17] sm:$0xf]  ;;  %v313_v1 = vld [vmem:[%s305_s17 + $0x8] sm:$0xf]  ;;  %v312_v2 = vld [vmem:[%s305_s17 + $0x4] sm:$0xf] }
  0x1f   : > { %325 = vrot.lane.b32.xlu0 %v311_v0, %s1742_s18  ;;  %329 = vrot.lane.b32.xlu1 %v313_v1, %s1742_s18  ;;  %v314_v3 = vld [vmem:[%s305_s17 + $0xc] sm:$0xf]  ;;  %v1330_v15 = vcombine.low %v311_v0, %v312_v2  ;;  %s317_s16 = scalar_select %p316_p0, 1, 0 }
  0x20   : > { %v1331_v17 = vcombine.low %v313_v1, %v314_v3  ;;  %s1750_s9 = smov 64  }
  0x23   : > { %327 = vrot.lane.b32.xlu0 %v312_v2, %s1742_s18  ;;  %331 = vrot.lane.b32.xlu1 %v314_v3, %s1742_s18 }
  0x91   : > { %v326_v6 = vpop.permute.xlu0 %325  ;;  %v330_v7 = vpop.permute.xlu1 %329 }
  0x92   : > { %v337_v9 = vmax.bf16 %v326_v6, %v311_v0  ;;  %v339_v11 = vmax.bf16 %v330_v7, %v313_v1 }
  0x94   : > { %345 = vrot.lane.b32.xlu0 %v337_v9, %s1743_s10 }
  0x95   : > { %v328_v12 = vpop.permute.xlu0 %327  ;;  %v332_v13 = vpop.permute.xlu1 %331 }
  0x96   : > { %v338_v14 = vmax.bf16 %v328_v12, %v312_v2  ;;  %v340_v16 = vmax.bf16 %v332_v13, %v314_v3 }
  0x98   : > { %349 = vrot.lane.b32.xlu0 %v339_v11, %s1743_s10  ;;  %347 = vrot.lane.b32.xlu1 %v338_v14, %s1743_s10 }
  0x9c   : > { %351 = vrot.lane.b32.xlu1 %v340_v16, %s1743_s10  ;;  %569 = vrot.lane.b32.xlu0 %v1330_v15, %s1742_s18 }
  0xa0   : > { %571 = vrot.lane.b32.xlu1 %v1331_v17, %s1742_s18  ;;  %658 = vrot.lane.b32.xlu0 %v1330_v15, %s1743_s10  ;;  %s1745_s18 = smov 16  }
  0xa4   : > { %660 = vrot.lane.b32.xlu1 %v1331_v17, %s1743_s10  ;;  %747 = vrot.lane.b32.xlu0 %v1330_v15, %s1744_s13  ;;  %s1751_s10 = smov 96  }
  0xa8   : > { %749 = vrot.lane.b32.xlu1 %v1331_v17, %s1744_s13 }
 0x106   : > { %v346_v18 = vpop.permute.xlu0 %345 }
 0x107   : > { %v357_v21 = vmax.bf16 %v346_v18, %v337_v9 }
 0x10a   : > { %v348_v19 = vpop.permute.xlu1 %347  ;;  %v350_v20 = vpop.permute.xlu0 %349 }
 0x10b   : > { %v358_v22 = vmax.bf16 %v348_v19, %v338_v14  ;;  %v359_v26 = vmax.bf16 %v350_v20, %v339_v11 }
 0x10d   : > { %v1321_v23 = vcombine.low %v357_v21, %v358_v22 }
 0x10e   : > { %v352_v24 = vpop.permute.xlu1 %351  ;;  %v570_v25 = vpop.permute.xlu0 %569 }
 0x10f   : > { %v360_v27 = vmax.bf16 %v352_v24, %v340_v16  ;;  %1405 = vmatprep.mubr.msk.bf16.mxu0 %vm379_vm1, %v1321_v23 }
 0x111   : > { %v1322_v28 = vcombine.low %v359_v26, %v360_v27 }
 0x112   : > { %v572_v29 = vpop.permute.xlu1 %571  ;;  %v659_v30 = vpop.permute.xlu0 %658 }
 0x113   : > { %1406 = vmatmul.mubr.msk.bf16.vlgmr.msra.gmra.mrb[0].mxu0 %vm379_vm1, %v1322_v28  ;;  %1423 = vmatprep.mubr.msk.bf16.mxu1 %vm379_vm1, %v659_v30 }
 0x114   : > { %1410 = vmatpush3.bf16.msra.mxu0 %v488_v10  ;;  %1411 = vmatprep.mubr.msk.bf16.mxu0 %vm379_vm1, %v1330_v15 }
 0x115   : > { %1455 = vmatprep.subr.msk.bf16.mxu0 %vm386_vm0, %v467_v8 }
 0x116   : > { %v661_v31 = vpop.permute.xlu1 %660  ;;  %v748_v32 = vpop.permute.xlu0 %747 }
 0x117   : > { %1424 = vmatmul.mubr.msk.bf16.vlgmr.msra.gmra.mrb[0].mxu1 %vm379_vm1, %v661_v31 }
 0x11a   : > { %v750_v33 = vpop.permute.xlu1 %749 }
 0x11b   : > { %1412 = vmatmul.mubr.msk.bf16.vlgmr.msra.gmra.mrb[4].mxu0 %vm379_vm1, %v1331_v17 }
 0x11c   : > { %1416 = vmatpush3.bf16.msra.mxu0 %v488_v10  ;;  %1417 = vmatprep.mubr.msk.bf16.mxu0 %vm379_vm1, %v570_v25 }
 0x11d   : > { %1457 = vmatprep.subr.msk.bf16.mxu0 %vm386_vm0, %v467_v8  ;;  %vm938_vm0 = vsmask.f32 256 }
 0x123   : > { %1418 = vmatmul.mubr.msk.bf16.vlgmr.msra.gmra.mrb[8].mxu0 %vm379_vm1, %v572_v29 }
 0x124   : > { %1428 = vmatpush3.bf16.msra.mxu0 %v488_v10  ;;  %1429 = vmatprep.mubr.msk.bf16.mxu0 %vm379_vm1, %v748_v32 }
 0x12b   : > { %1430 = vmatmul.mubr.msk.bf16.vlgmr.msra.gmra.mrb[12].mxu0 %vm379_vm1, %v750_v33  ;;  %vm955_vm1 = vcmask 1040384  }
 0x1e6   : > { %v1904_v34 = vpop.f32.mrb[0].mxu0 }
 0x1e7   : > { %v1906_v35 = vpop.f32.mrb[1].mxu0 }
 0x1e8   : > { %v1908_v36 = vpop.f32.mrb[2].mxu0 }
 0x1e9   : > { %v1915_v38 = vpop.f32.mrb[3].mxu0 }
 0x1ea   : > { %v1425_v39 = vpop.f32.mrb[0].mxu1 }
 0x1eb   : > { %v1918_v40 = vadd.f32 %v1425_v39, %v1913_v37  ;;  %v702_v41 = vpop.f32.mrb[1].mxu1 }
 0x1ec   : > { %v1921_v42 = vadd.f32 %v1913_v37, %v702_v41  ;;  %v1426_v43 = vpop.f32.mrb[2].mxu1 }
 0x1ed   : > { %v1348_v44 = vmul.f32 -1.442695, %v1918_v40  ;;  %v1925_v45 = vadd.f32 %v1426_v43, %v1913_v37  ;;  %v705_v46 = vpop.f32.mrb[3].mxu1 }
 0x1ee   : > { %v1346_v47 = vmul.f32 -1.442695, %v1921_v42  ;;  %v1929_v48 = vadd.f32 %v1913_v37, %v705_v46  ;;  %v1413_v49 = vpop.f32.mrb[4].mxu0 }
 0x1ef   : > { %1550 = vpow2.f32 %v1348_v44  ;;  %v1349_v50 = vmul.f32 -1.442695, %v1925_v45  ;;  %v1933_v51 = vadd.f32 %v1413_v49, %v1913_v37  ;;  %v524_v52 = vpop.f32.mrb[5].mxu0 }
 0x1f0   : > { %1552 = vpow2.f32 %v1346_v47  ;;  %v1347_v53 = vmul.f32 -1.442695, %v1929_v48  ;;  %v1937_v54 = vadd.f32 %v1913_v37, %v524_v52  ;;  %v1414_v55 = vpop.f32.mrb[6].mxu0 }
 0x1f1   : > { %1554 = vpow2.f32 %v1349_v50  ;;  %v1336_v56 = vmul.f32 -1.442695, %v1933_v51  ;;  %v1941_v57 = vadd.f32 %v1414_v55, %v1913_v37  ;;  %v527_v58 = vpop.f32.mrb[7].mxu0 }
 0x1f2   : > { %1556 = vpow2.f32 %v1347_v53  ;;  %v1334_v59 = vmul.f32 -1.442695, %v1937_v54  ;;  %v1945_v60 = vadd.f32 %v1913_v37, %v527_v58 }
 0x1f3   : > { %1558 = vpow2.f32 %v1336_v56  ;;  %v1337_v61 = vmul.f32 -1.442695, %v1941_v57 }
 0x1f4   : > { %1560 = vpow2.f32 %v1334_v59  ;;  %v1335_v62 = vmul.f32 -1.442695, %v1945_v60 }
 0x1f5   : > { %1562 = vpow2.f32 %v1337_v61 }
 0x1f6   : > { %1564 = vpow2.f32 %v1335_v62  ;;  %v1419_v63 = vpop.f32.mrb[8].mxu0 }
 0x1f7   : > { %v613_v0 = vpop.f32.mrb[9].mxu0  ;;  %v1950_v10 = vadd.f32 %v1419_v63, %v1913_v37 }
 0x1f8   : > { %v1420_v1 = vpop.f32.mrb[10].mxu0  ;;  %v1953_v13 = vadd.f32 %v1913_v37, %v613_v0 }
 0x1f9   : > { %v1551_v2 = vpop.eup %1550  ;;  %v616_v3 = vpop.f32.mrb[11].mxu0  ;;  %v1956_v16 = vadd.f32 %v1420_v1, %v1913_v37  ;;  %v1342_v24 = vmul.f32 -1.442695, %v1950_v10 }
 0x1fa   : > { %v1553_v4 = vpop.eup %1552  ;;  %v731_v5 = vadd.f32 1.0, %v1551_v2  ;;  %v1959_v20 = vadd.f32 %v1913_v37, %v616_v3  ;;  %v1340_v28 = vmul.f32 -1.442695, %v1953_v13 }
 0x1fb   : > { %v1555_v6 = vpop.eup %1554  ;;  %v729_v7 = vadd.f32 1.0, %v1553_v4  ;;  %v1343_v31 = vmul.f32 -1.442695, %v1956_v16 }
 0x1fc   : > { %v1557_v8 = vpop.eup %1556  ;;  %1566 = vrcp.f32 %v731_v5  ;;  %v732_v9 = vadd.f32 1.0, %v1555_v6  ;;  %v1341_v33 = vmul.f32 -1.442695, %v1959_v20 }
 0x1fd   : > { %v1559_v11 = vpop.eup %1558  ;;  %1568 = vrcp.f32 %v729_v7  ;;  %v730_v12 = vadd.f32 1.0, %v1557_v8 }
 0x1fe   : > { %v1561_v14 = vpop.eup %1560  ;;  %1570 = vrcp.f32 %v732_v9  ;;  %v553_v15 = vadd.f32 1.0, %v1559_v11  ;;  %v1431_v17 = vpop.f32.mrb[12].mxu0 }
 0x1ff   : > { %v1563_v18 = vpop.eup %1562  ;;  %1572 = vrcp.f32 %v730_v12  ;;  %v551_v19 = vadd.f32 1.0, %v1561_v14  ;;  %v791_v21 = vpop.f32.mrb[13].mxu0  ;;  %v1963_v25 = vadd.f32 %v1431_v17, %v1913_v37 }
 0x200   : > { %v1565_v22 = vpop.eup %1564  ;;  %1574 = vrcp.f32 %v553_v15  ;;  %v554_v23 = vadd.f32 1.0, %v1563_v18  ;;  %v1432_v26 = vpop.f32.mrb[14].mxu0  ;;  %v1967_v29 = vadd.f32 %v1913_v37, %v791_v21 }
 0x201   : > { %1576 = vrcp.f32 %v551_v19  ;;  %v552_v27 = vadd.f32 1.0, %v1565_v22  ;;  %v794_v30 = vpop.f32.mrb[15].mxu0  ;;  %v1971_v32 = vadd.f32 %v1432_v26, %v1913_v37  ;;  %v1354_v41 = vmul.f32 -1.442695, %v1963_v25 }
 0x202   : > { %1578 = vrcp.f32 %v554_v23  ;;  %v1975_v39 = vadd.f32 %v1913_v37, %v794_v30  ;;  %v1352_v43 = vmul.f32 -1.442695, %v1967_v29 }
 0x203   : > { %1580 = vrcp.f32 %v552_v27  ;;  %v1355_v46 = vmul.f32 -1.442695, %v1971_v32 }
 0x204   : > { %1582 = vpow2.f32 %v1342_v24  ;;  %v1353_v49 = vmul.f32 -1.442695, %v1975_v39 }
 0x205   : > { %1584 = vpow2.f32 %v1340_v28 }
 0x206   : > { %v1567_v44 = vpop.eup %1566  ;;  %1586 = vpow2.f32 %v1343_v31 }
 0x207   : > { %v1569_v47 = vpop.eup %1568  ;;  %1588 = vpow2.f32 %v1341_v33  ;;  %v743_v37 = vmul.f32 %v1567_v44, %v1918_v40 }
 0x208   : > { %v1571_v50 = vpop.eup %1570  ;;  %1590 = vpow2.f32 %v1354_v41  ;;  %v741_v56 = vmul.f32 %v1569_v47, %v1921_v42  ;;  %v1546_v47 = vld [vmem:[%s2213_s5 + $0x20] sm:$0xff]  }
 0x209   : > { %v1573_v52 = vpop.eup %1572  ;;  %v744_v53 = vmul.f32 %v1571_v50, %v1925_v45  ;;  %1592 = vpow2.f32 %v1352_v43  ;;  %v881_v50 = vlaneseq }
 0x20a   : > { %v1575_v55 = vpop.eup %1574  ;;  %v742_v58 = vmul.f32 %v1573_v52, %v1929_v48  ;;  %1594 = vpow2.f32 %v1355_v46 }
 0x20b   : > { %v1577_v59 = vpop.eup %1576  ;;  %1596 = vpow2.f32 %v1353_v49  ;;  %v746_v61 = vpack.c.bf16 %v744_v53, %v743_v37  ;;  %v1986_v1 = vmul.f32 %v1575_v55, %v1933_v51  ;;  %v1547_v49 = vld [vmem:[%s2213_s5 + $0x28] sm:$0xff]   ;;  %v882_v52 = vshrl.u32 %v881_v50, 7 }
 0x20c   : > { %v1579_v62 = vpop.eup %1578  ;;  %v745_v63 = vpack.c.bf16 %v742_v58, %v741_v56  ;;  %v1992_v42 = vmul.f32 %v1577_v59, %v1937_v54 }
 0x20d   : > { %v1581_v0 = vpop.eup %1580  ;;  %v1989_v40 = vmul.f32 %v1579_v62, %v1941_v57  ;;  %846 = vrot.lane.b32.xlu1 %v746_v61, %s1745_s18  ;;  %v884_v37 = vadd.s32 16, %v882_v52  ;;  %v885_v53 = vadd.s32 24, %v882_v52  ;;  %v883_v55 = vadd.s32 8, %v882_v52 }
 0x20e   : > { %v1583_v45 = vpop.eup %1582  ;;  %v1995_v48 = vmul.f32 %v1581_v0, %v1945_v60  ;;  %844 = vrot.lane.b32.xlu0 %v745_v63, %s1745_s18  ;;  %v890_v59 = vand.u32 7, %v882_v52  ;;  %s294_s18 = sand.u32 1, %s1716_s25  }
 0x20f   : > { %v1585_v2 = vpop.eup %1584  ;;  %v568_v3 = vpack.c.bf16 %v1989_v40, %v1986_v1  ;;  %v642_v4 = vadd.f32 1.0, %v1583_v45  ;;  %v904_v56 = vand.u32 7, %v884_v37  ;;  %v911_v58 = vand.u32 7, %v885_v53  ;;  %s2155_s17 = scalar_lea.sflag [#allocation4], %s294_s18 }
 0x210   : > { %v1587_v51 = vpop.eup %1586  ;;  %v567_v57 = vpack.c.bf16 %v1995_v48, %v1992_v42  ;;  %v640_v5 = vadd.f32 1.0, %v1585_v2  ;;  %v897_v61 = vand.u32 7, %v883_v55  ;;  %vm2038_vm4 = vcmp.eq.s32.totalorder %v890_v59, 0 }
 0x211   : > { %v1589_v6 = vpop.eup %1588  ;;  %1598 = vrcp.f32 %v642_v4  ;;  %v643_v7 = vadd.f32 1.0, %v1587_v51  ;;  %vm2030_vm2 = vcmp.eq.s32.totalorder %v904_v56, 0  ;;  %vm2034_vm3 = vcmp.eq.s32.totalorder %v911_v58, 0  ;;  %v1548_v4 = vld [vmem:[%s2213_s5 + $0x30] sm:$0xff]   ;;  %vm966_vm9 = vmpackc.low %vm2038_vm4, %vm2038_vm4 }
 0x212   : > { %v1591_v8 = vpop.eup %1590  ;;  %1600 = vrcp.f32 %v640_v5  ;;  %v641_v54 = vadd.f32 1.0, %v1589_v6  ;;  %v318_v51 = vstv %s317_s16  ;;  %vm968_vm6 = vmpackc.low %vm2030_vm2, %vm2030_vm2  ;;  %vm2048_vm7 = vcmp.eq.s32.totalorder %v897_v61, 0 }
 0x213   : > { %v1593_v9 = vpop.eup %1592  ;;  %1602 = vrcp.f32 %v643_v7  ;;  %v820_v60 = vadd.f32 1.0, %v1591_v8  ;;  %vm969_vm8 = vmpackc.low %vm2034_vm3, %vm2034_vm3  ;;  %vm2062_vm11 = vcmp.eq.s32.totalorder %v318_v51, 1  ;;  %v1748_v1 = vmov 0  }
 0x214   : > { %v1595_v11 = vpop.eup %1594  ;;  %1604 = vrcp.f32 %v641_v54  ;;  %v818_v12 = vadd.f32 1.0, %v1593_v9  ;;  %v315_v54 = vld [vmem:[#allocation2] sm:$0xf]  ;;  %vm967_vm12 = vmpackc.low %vm2048_vm7, %vm2048_vm7  ;;  %v972_v40 = vsel %vm968_vm6, 65537, %v1748_v1  ;;  %vm1017_vm6 = vcmask 261120  }
 0x215   : > { %v1597_v14 = vpop.eup %1596  ;;  %1606 = vrcp.f32 %v820_v60  ;;  %v821_v15 = vadd.f32 1.0, %v1595_v11  ;;  %v1549_v11 = vld [vmem:[%s2213_s5 + $0x38] sm:$0xff]   ;;  %v320_v48 = vsel %vm2062_vm11, 0, %v315_v54  ;;  %vm2097_vm2 = vmand %vm955_vm1, %vm938_vm0  ;;  %vm1024_vm7 = vcmask 523264  }
 0x216   : > { %1608 = vrcp.f32 %v818_v12  ;;  %v819_v17 = vadd.f32 1.0, %v1597_v14  ;;  %v971_v14 = vsel %vm967_vm12, 65537, %v1748_v1 }
 0x217   : > { %1610 = vrcp.f32 %v821_v15 }
 0x218   : > { %1612 = vrcp.f32 %v819_v17 }
 0x21b   : > { %v1599_v18 = vpop.eup %1598 }
 0x21c   : > { %v1601_v19 = vpop.eup %1600  ;;  %v654_v23 = vmul.f32 %v1599_v18, %v1950_v10 }
 0x21d   : > { %v1603_v21 = vpop.eup %1602  ;;  %v652_v27 = vmul.f32 %v1601_v19, %v1953_v13 }
 0x21e   : > { %v1605_v22 = vpop.eup %1604  ;;  %v655_v24 = vmul.f32 %v1603_v21, %v1956_v16 }
 0x21f   : > { %v1607_v26 = vpop.eup %1606  ;;  %v653_v28 = vmul.f32 %v1605_v22, %v1959_v20 }
 0x220   : > { %v1609_v30 = vpop.eup %1608  ;;  %v657_v31 = vpack.c.bf16 %v655_v24, %v654_v23  ;;  %v832_v44 = vmul.f32 %v1607_v26, %v1963_v25  ;;  %v1542_v25 = vld [vmem:[%s2213_s5] sm:$0xff]  }
 0x221   : > { %v1611_v33 = vpop.eup %1610  ;;  %v656_v41 = vpack.c.bf16 %v653_v28, %v652_v27  ;;  %v830_v10 = vmul.f32 %v1609_v30, %v1967_v29  ;;  %1433 = vmatprep.subr.bf16.mxu1 %v1542_v25  ;;  %v1544_v29 = vld [vmem:[%s2213_s5 + $0x10] sm:$0xff]  }
 0x222   : > { %v1613_v43 = vpop.eup %1612  ;;  %v833_v46 = vmul.f32 %v1611_v33, %v1971_v32  ;;  %840 = vrot.lane.b32.xlu1 %v657_v31, %s1746_s21  ;;  %v1543_v32 = vld [vmem:[%s2213_s5 + $0x8] sm:$0xff]   ;;  %1434 = vmatpush3.bf16.msra.mxu1 %v1542_v25 }
 0x223   : > { %v831_v16 = vmul.f32 %v1613_v43, %v1975_v39  ;;  %838 = vrot.lane.b32.xlu0 %v656_v41, %s1746_s21  ;;  %1435 = vmatprep.subr.bf16.mxu1 %v1543_v32  ;;  %v1545_v39 = vld [vmem:[%s2213_s5 + $0x18] sm:$0xff]  }
 0x224   : > { %v835_v13 = vpack.c.bf16 %v833_v46, %v832_v44 }
 0x225   : > { %v834_v20 = vpack.c.bf16 %v831_v16, %v830_v10  ;;  %v1320_v16 = vld [vmem:[%s2210_s2] ss:$0 sm:$0xff] }
 0x226   : > { %852 = vrot.lane.b32.xlu1 %v835_v13, %s1747_s22  ;;  %1436 = vmatpush3.bf16.msra.mxu1 %v1543_v32  ;;  %v425_v13 = vadd.f32 %v1320_v16, %v1906_v35  ;;  %v433_v25 = vadd.f32 %v1904_v34, %v1320_v16 }
 0x227   : > { %850 = vrot.lane.b32.xlu0 %v834_v20, %s1747_s22  ;;  %1437 = vmatprep.subr.bf16.mxu1 %v1544_v29  ;;  %s1374_s22 = sshll.u32 %s1728_s28, 3 }
 0x22a   : > { %1438 = vmatpush3.bf16.msra.mxu1 %v1544_v29 }
 0x22b   : > { %1439 = vmatprep.subr.bf16.mxu1 %v1545_v39 }
 0x22e   : > { %1440 = vmatpush3.bf16.msra.mxu1 %v1545_v39 }
 0x22f   : > { %1441 = vmatprep.subr.bf16.mxu1 %v1546_v47 }
 0x232   : > { %1442 = vmatpush3.bf16.msra.mxu1 %v1546_v47 }
 0x233   : > { %1443 = vmatprep.subr.bf16.mxu1 %v1547_v49 }
 0x236   : > { %1444 = vmatpush3.bf16.msra.mxu1 %v1547_v49 }
 0x237   : > { %1445 = vmatprep.subr.bf16.mxu1 %v1548_v4 }
 0x23a   : > { %1446 = vmatpush3.bf16.msra.mxu1 %v1548_v4 }
 0x23b   : > { %1447 = vmatprep.subr.bf16.mxu1 %v1549_v11 }
 0x23e   : > { %1448 = vmatpush3.bf16.msra.mxu1 %v1549_v11 }
 0x27f   : > { %v847_v63 = vpop.permute.xlu1 %846 }
 0x280   : > { %v845_v45 = vpop.permute.xlu0 %844 }
 0x294   : > { %v841_v6 = vpop.permute.xlu1 %840 }
 0x295   : > { %v860_v7 = vsel %vm854_vm5, %v568_v3, %v841_v6  ;;  %v839_v8 = vpop.permute.xlu0 %838  ;;  %v973_v3 = vsel %vm969_vm8, 65537, %v1748_v1  ;;  %vm1029_vm8 = vcmask 785408  }
 0x296   : > { %v857_v60 = vsel %vm854_vm5, %v567_v57, %v839_v8  ;;  %v865_v12 = vsel %vm861_vm10, %v860_v7, %v847_v63  ;;  %v970_v57 = vsel %vm966_vm9, 65537, %v1748_v1  ;;  %v1357_v19 = vcombine.low %v972_v40, %v973_v3 }
 0x297   : > { %v863_v18 = vsel %vm861_vm10, %v857_v60, %v845_v45  ;;  %v1356_v28 = vcombine.low %v970_v57, %v971_v14  ;;  %v1358_v60 = vld [vmem:[%s2214_s6] ss:$0 sm:$0xff] }
 0x298   : > { %v853_v42 = vpop.permute.xlu1 %852  ;;  %vm2101_vm3 = vcmp.ne.s16.totalorder %v1357_v19, 0 }
 0x299   : > { %v870_v15 = vsel %vm866_vm13, %v865_v12, %v853_v42  ;;  %v851_v17 = vpop.permute.xlu0 %850  ;;  %vm2105_vm4 = vcmp.ne.s16.totalorder %v1356_v28, 0 }
 0x29a   : > { %v990_v21 = vshrl.u32 %v870_v15, 16  ;;  %v1371_v22 = vcombine.high %v870_v15, %v870_v15  ;;  %v868_v23 = vsel %vm866_vm13, %v863_v18, %v851_v17  ;;  %v875_v27 = vrot.slane %v870_v15, 4 }
 0x29b   : > { %v874_v24 = vrot.slane %v868_v23, 4  ;;  %v984_v26 = vshrl.u32 %v868_v23, 16  ;;  %v993_v31 = vshll.u32 %v870_v15, 16  ;;  %v987_v41 = vshll.u32 %v868_v23, 16 }
 0x29c   : > { %v992_v30 = vrot.slane %v990_v21, 7  ;;  %1188 = vst.msk [vmem:[#allocation2] sm:$0xf] %vm1187_vm15, %v1371_v22 }
 0x29d   : > { %v986_v33 = vrot.slane %v984_v26, 7  ;;  %v880_v43 = vsel %vm873_vm14, %v320_v48, %v874_v24  ;;  %v876_v44 = vsel %vm873_vm14, %v874_v24, %v875_v27 }
 0x29e   : > { %1003 = vrot.lane.b32.xlu0 %v880_v43, %s1749_s23  ;;  %v939_v46 = vshrl.u32 %v880_v43, 16  ;;  %1005 = vrot.lane.b32.xlu1 %v876_v44, %s1749_s23  ;;  %v946_v10 = vshrl.u32 %v876_v44, 16  ;;  %v995_v20 = vor.u32 %v993_v31, %v992_v30  ;;  %v942_v39 = vshll.u32 %v880_v43, 16  ;;  %s1316_s23 = sshll.u32 %s294_s18, 5 }
 0x29f   : > { %v989_v32 = vor.u32 %v987_v41, %v986_v33  ;;  %v949_v49 = vshll.u32 %v876_v44, 16  ;;  %s296_s13 = scalar_lea.vmem [#allocation3], %s1316_s23  ;;  %s1752_s23 = smov [#allocation3]  }
 0x2a0   : > { %v941_v29 = vrot.slane %v939_v46, 7  ;;  %v948_v47 = vrot.slane %v946_v10, 7  ;;  %v996_v50 = vsel %vm938_vm0, %v986_v33, %v995_v20  ;;  %v428_v20 = vadd.f32 %v1320_v16, %v1915_v38  ;;  %s1229_s16 = sshll.u32 %s296_s13, 4  ;;  %s2150_s16 = int_to_ptr.vmem [resolvable:$true] %s1229_s16 }
 0x2a1   : > { %v999_v52 = vsel %vm2097_vm2, 0, %v989_v32  ;;  %v1001_v55 = vsel %vm2101_vm3, 0, %v996_v50  ;;  %v1325_v32 = vmul.f32 -1.442695, %v425_v13 }
 0x2a2   : > { %v944_v37 = vor.u32 %v942_v39, %v941_v29  ;;  %v951_v53 = vor.u32 %v949_v49, %v948_v47  ;;  %v1000_v56 = vsel %vm2105_vm4, 0, %v999_v52  ;;  %1011 = vrot.lane.b32.xlu1 %v1001_v55, %s1750_s9  ;;  %v1326_v39 = vmul.f32 -1.442695, %v428_v20 }
 0x2a3   : > { %1009 = vrot.lane.b32.xlu0 %v1000_v56, %s1750_s9  ;;  %v1327_v47 = vmul.f32 -1.442695, %v433_v25  ;;  %s1226_s9 = sadd.s32 %s1374_s22, %s1866_s20  ;;  %s1646_s22 = scalar_lea.vmem %s2150_s16, 512 }
 0x2a4   : > { %v952_v58 = vsel %vm938_vm0, %v941_v29, %v951_v53  ;;  %v957_v59 = vsel %vm2097_vm2, 0, %v944_v37  ;;  %v436_v29 = vadd.f32 %v1908_v36, %v1320_v16  ;;  %p1647_p1 = scmp.ne.s32.totalorder %s2150_s16, %s1646_s22 }
 0x2a5   : > { %v983_v61 = vsel %vm2101_vm3, 0, %v952_v58  ;;  %v982_v62 = vsel %vm2105_vm4, 0, %v957_v59 }
 0x2a6   : > { %1015 = vrot.lane.b32.xlu1 %v870_v15, %s1751_s10  ;;  %v1328_v49 = vmul.f32 -1.442695, %v436_v29  ;;  %p1648_p2 = pnand %p1647_p1, %p1845_p3 }
 0x2a7   : > { %1013 = vrot.lane.b32.xlu0 %v868_v23, %s1751_s10  ;;  %s1375_s10 = sshll.u32 %s1226_s9, 7  ;;  %s1650_s9 = sshll.u32 %s1752_s23, 4  ;;  %s1651_s9 = int_to_ptr.vmem [resolvable:$false] %s1650_s9 }
 0x2a8   : > { %s2147_s27 = scalar_lea.hbm %s2215_s7, %s1375_s10  ;;  %p1649_p4 = pneg %p1648_p2 }
 0x2a9   : > { %s1652_s10 = scalar_lea.vmem %s1651_s9, 1024  ;;  %p1653_p5 = scmp.lt.s32.totalorder %s2150_s16, %s1651_s9 }
 0x2aa   : > { %p1654_p6 = scmp.lt.s32.totalorder %s1652_s10, %s1646_s22 }
 0x2ac   : > { %p1655_p7 = por %p1654_p6, %p1653_p5 }
 0x2ae   : > { %p1656_p9 = pnand %p1655_p7, %p1649_p4 }
 0x310   : > { %v1004_v63 = vpop.permute.xlu0 %1003  ;;  %v1006_v0 = vpop.permute.xlu1 %1005 }
 0x311   : > { %v1020_v4 = vsel %vm1017_vm6, %v982_v62, %v1004_v63  ;;  %v1023_v51 = vsel %vm1017_vm6, %v983_v61, %v1006_v0 }
 0x314   : > { %v1012_v45 = vpop.permute.xlu1 %1011 }
 0x315   : > { %v1010_v2 = vpop.permute.xlu0 %1009  ;;  %v1028_v8 = vsel %vm1024_vm7, %v1023_v51, %v1012_v45 }
 0x316   : > { %v1026_v5 = vsel %vm1024_vm7, %v1020_v4, %v1010_v2 }
 0x318   : > { %v1016_v6 = vpop.permute.xlu1 %1015 }
 0x319   : > { %v1014_v7 = vpop.permute.xlu0 %1013  ;;  %v1034_v9 = vsel %vm1029_vm8, %v1028_v8, %v1016_v6 }
 0x31a   : > { %v1031_v54 = vsel %vm1029_vm8, %v1026_v5, %v1014_v7 }
 0x31b   : > { %1449 = vmatprep.mubr.bf16.mxu1 %v1031_v54 }
 0x31c   : > { %1450 = vmatmul.mubr.bf16.vlgmr.msra.gmra.mrb[4].mxu1 %v1034_v9 }
 0x3ef   : > { %v1451_v1 = vpop.f32.mrb[4].mxu1 }
 0x3f0   : > { %v1150_v40 = vadd.f32 %v1451_v1, %v1358_v60  ;;  %v1141_v3 = vpop.f32.mrb[5].mxu1 }
 0x3f1   : > { %v1142_v11 = vadd.f32 %v1358_v60, %v1141_v3  ;;  %v1452_v12 = vpop.f32.mrb[6].mxu1 }
 0x3f2   : > { %v1369_v42 = vmul.f32 -1.442695, %v1150_v40  ;;  %v1153_v48 = vadd.f32 %v1452_v12, %v1358_v60  ;;  %v1144_v57 = vpop.f32.mrb[7].mxu1 }
 0x3f3   : > { %v1367_v14 = vmul.f32 -1.442695, %v1142_v11  ;;  %v1145_v15 = vadd.f32 %v1358_v60, %v1144_v57 }
 0x3f4   : > { %1614 = vpow2.f32 %v1369_v42  ;;  %v1370_v17 = vmul.f32 -1.442695, %v1153_v48 }
 0x3f5   : > { %1616 = vpow2.f32 %v1367_v14  ;;  %v1368_v18 = vmul.f32 -1.442695, %v1145_v15 }
 0x3f6   : > { %1618 = vpow2.f32 %v1370_v17 }
 0x3f7   : > { %1620 = vpow2.f32 %v1368_v18 }
 0x3fe   : > { %v1615_v19 = vpop.eup %1614 }
 0x3ff   : > { %v1617_v21 = vpop.eup %1616  ;;  %v1170_v22 = vadd.f32 1.0, %v1615_v19 }
 0x400   : > { %v1619_v23 = vpop.eup %1618  ;;  %v1168_v24 = vadd.f32 1.0, %v1617_v21 }
 0x401   : > { %v1621_v26 = vpop.eup %1620  ;;  %v1171_v27 = vadd.f32 1.0, %v1619_v23 }
 0x402   : > { %1622 = vrcp.f32 %v1168_v24  ;;  %v1169_v28 = vadd.f32 1.0, %v1621_v26 }
 0x403   : > { %1624 = vrcp.f32 %v1170_v22 }
 0x404   : > { %1626 = vrcp.f32 %v1169_v28 }
 0x405   : > { %1628 = vrcp.f32 %v1171_v27 }
 0x406   : > { %1630 = vpow2.f32 %v1325_v32 }
 0x407   : > { %1632 = vpow2.f32 %v1326_v39 }
 0x408   : > { %1634 = vpow2.f32 %v1327_v47 }
 0x409   : > { %1636 = vpow2.f32 %v1328_v49 }
 0x40c   : > { %v1623_v30 = vpop.eup %1622 }
 0x40d   : > { %v1625_v31 = vpop.eup %1624  ;;  %v1180_v33 = vmul.f32 %v1623_v30, %v1142_v11 }
 0x40e   : > { %v1627_v41 = vpop.eup %1626  ;;  %v1182_v46 = vmul.f32 %v1625_v31, %v1150_v40 }
 0x40f   : > { %v1181_v43 = vmul.f32 %v1627_v41, %v1145_v15  ;;  %1193 = vrot.lane.b32.xlu0 %v1180_v33, %s1746_s21  ;;  %v1629_v44 = vpop.eup %1628 }
 0x410   : > { %v1183_v10 = vmul.f32 %v1629_v44, %v1153_v48  ;;  %v1631_v50 = vpop.eup %1630 }
 0x411   : > { %1195 = vrot.lane.b32.xlu1 %v1181_v43, %s1746_s21  ;;  %v1633_v52 = vpop.eup %1632  ;;  %v451_v35 = vadd.f32 1.0, %v1631_v50 }
 0x412   : > { %v1635_v37 = vpop.eup %1634  ;;  %v452_v38 = vadd.f32 1.0, %v1633_v52 }
 0x413   : > { %1197 = vrot.lane.b32.xlu0 %v1182_v46, %s1746_s21  ;;  %v1637_v53 = vpop.eup %1636  ;;  %v453_v34 = vadd.f32 1.0, %v1635_v37  ;;  %1638 = vrcp.f32 %v451_v35 }
 0x414   : > { %v454_v55 = vadd.f32 1.0, %v1637_v53  ;;  %1640 = vrcp.f32 %v452_v38 }
 0x415   : > { %1199 = vrot.lane.b32.xlu1 %v1183_v10, %s1746_s21  ;;  %1642 = vrcp.f32 %v453_v34 }
 0x416   : > { %1644 = vrcp.f32 %v454_v55 }
 0x41d   : > { %v1639_v36 = vpop.eup %1638 }
 0x41e   : > { %v1641_v56 = vpop.eup %1640  ;;  %v463_v58 = vmul.f32 %v1639_v36, %v425_v13 }
 0x41f   : > { %v1643_v59 = vpop.eup %1642  ;;  %v464_v62 = vmul.f32 %v1641_v56, %v428_v20 }
 0x420   : > { %v1645_v0 = vpop.eup %1644  ;;  %v465_v2 = vmul.f32 %v1643_v59, %v433_v25 }
 0x421   : > { %v466_v5 = vmul.f32 %v1645_v0, %v436_v29 }
 0x481   : > { %v1194_v61 = vpop.permute.xlu0 %1193 }
 0x482   : > { %v1205_v63 = vsel %vm854_vm5, %v463_v58, %v1194_v61 }
 0x483   : > { %1209 = vst.msk [vmem:[%s296_s13] sm:$0xff] %vm861_vm10, %v1205_v63  ;;  %v1196_v45 = vpop.permute.xlu1 %1195 }
 0x484   : > { %v1206_v4 = vsel %vm854_vm5, %v464_v62, %v1196_v45 }
 0x485   : > { %1210 = vst.msk [vmem:[%s296_s13 + $0x8] sm:$0xff] %vm861_vm10, %v1206_v4  ;;  %v1198_v51 = vpop.permute.xlu0 %1197 }
 0x486   : > { %v1207_v6 = vsel %vm854_vm5, %v465_v2, %v1198_v51 }
 0x487   : > { %1211 = vst.msk [vmem:[%s296_s13 + $0x10] sm:$0xff] %vm861_vm10, %v1207_v6  ;;  %v1200_v7 = vpop.permute.xlu1 %1199 }
 0x488   : > { %v1208_v8 = vsel %vm854_vm5, %v466_v5, %v1200_v7 }
 0x489   : > { %1212 = vst.msk [vmem:[%s296_s13 + $0x18] sm:$0xff] %vm861_vm10, %v1208_v8 }
 0x48a   : > { %1659 = shalt.err (!%p1656_p9)
}
 0x48b   : > { %s1660_s18 = scalar_lea.hbm %s2147_s27, 512  ;;  %s1664_s20 = scalar_lea.hbm %s2215_s7, 2048 }
 0x48c   : > { %p1661_p10 = scmp.ne.s32.totalorder %s2147_s27, %s1660_s18  ;;  %p1665_p13 = scmp.lt.u32.totalorder %s2147_s27, %s2215_s7 }
 0x48d   : > { %p1666_p0 = scmp.lt.u32.totalorder %s1664_s20, %s1660_s18  ;;  %p1668_p2 = scmp.lt.u32.totalorder %s1660_s18, %s2147_s27 }
 0x48e   : > { %p1662_p11 = pnand %p1661_p10, %p1845_p3 }
 0x48f   : > { %p1667_p1 = por %p1666_p0, %p1665_p13 }
 0x490   : > { %p1663_p12 = pneg %p1662_p11 }
 0x491   : > { %p1669_p4 = por %p1668_p2, %p1667_p1 }
 0x493   : > { %p1670_p5 = pnand %p1669_p4, %p1663_p12 }
 0x495   : > { %1673 = shalt.err (!%p1670_p5)
}
 0x496   : > { %s1753_s22 = smov 128  }
 0x497   : > { %1458 = dma.vmem_to_hbm [thread:$0]  (%p1845_p3), %s2150_s16, 512, %s2147_s27, %s2155_s17, %s1753_s22, %s1753_s22, %s1746_s21  }
 0x498 PF: > { %p1464_p6 = scmp.ge.s32.totalorder %s1740_s8, 2  ;;  %s1244_s10 = sand.u32 1, %s1712_s24  }
 0x499   : > { %s1245_s18 = scalar_lea.sflag [#allocation4], %s1244_s10 }
 0x49a   : > { %p1461_p7 = pnand %p1464_p6, %p1854_p8 }
 0x49c   : > { %1707 = dma.done.wait (!%p1461_p7), %s1245_s18, 512  }
 0x49d   : > { %1709 = vsyncadd (!%p1461_p7), %s1245_s18, 4294966784  ;;  %s20_s8 = sadd.s32 1, %s1740_s8   ;;  %s2234_s24 = smov %s1716_s25 }
 0x49e   : > { %p17_p9 = scmp.ge.s32.totalorder %s20_s8, 6   ;;  %s2235_s25 = smov %s1720_s26 }
 0x49f   : > { %s2236_s26 = smov %s1863_s19  ;;  %s2237_s27 = smov %s1732_s29 }
 0x4a0   : > { %s2238_s28 = smov %s1736_s30  ;;  %s2239_s29 = smov %s2242_s11 }
 0x4a1   : > { %s2240_s30 = smov %s2246_s12  ;;  %19 = sbr.rel (!%p17_p9) target bundleno = 5 (0x5), region = 83 }
 0x4a8   :  { %1250 = vsyncpa [#allocation4], 1 }
 0x4a9   :  { %1252 = vsyncpa [#allocation4 + $0x1], 1 }

</bundles_post_ra>
